<compile_context>
chip_gen: v7x
topology: tpu7x:2x2x1
jax: 0.10.0
libtpu: 0.0.40
codegen_flags: <defaults>
</compile_context>

<pallas_src>
import functools
import math

import jax
import jax.numpy as jnp
from jax.experimental import pallas as pl
from jax.experimental.pallas import tpu as pltpu

_LANES = 128  # vreg lane width


def _sublane(dtype) -> int:
    # Sublane packing per dtype: f32 -> 8, bf16 -> 16, int8/fp8 -> 32.
    return max(8, 32 // jnp.dtype(dtype).itemsize)


@functools.lru_cache(maxsize=None)
def _num_tensorcores() -> int:
    """Best-effort TensorCore count per chip (v5e/v6e: 1, v7x: 2)."""
    try:
        info = pltpu.get_tpu_info()
        for attr in ("num_cores", "core_count", "tensorcores_per_chip", "num_tensorcores"):
            v = getattr(info, attr, None)
            if isinstance(v, int) and v > 0:
                return v
    except Exception:
        pass
    return 1  # safe fallback: no forced megacore split


def _sigmoid_kernel(w_ref, o_ref, *, approx: bool):
    # Elementwise sigmoid on the current (tile_rows, C) tile.
    x = w_ref[...].astype(jnp.float32)
    # 1 / (1 + exp(-x)).  approx=True pins the reciprocal to the EUP slot
    # (only enable when ~1e-4 absolute error is acceptable).
    y = pl.reciprocal(1.0 + jnp.exp(-x), approx=approx)
    o_ref[...] = y.astype(o_ref.dtype)


def _sigmoid_2d(x2d, out_dtype, approx, max_block_bytes, min_parallel):
    """Pallas sigmoid over a 2-D view; no data movement added by the wrapper."""
    rows, cols = x2d.shape
    sub = _sublane(x2d.dtype)
    in_bytes = jnp.dtype(x2d.dtype).itemsize
    out_bytes = jnp.dtype(out_dtype).itemsize

    # Cap combined (in + out) bytes per block; double-buffered residency is
    # 2 * max_block_bytes, well under the 32 MiB scoped-VMEM default on v7x.
    row_bytes = cols * (in_bytes + out_bytes)
    max_rows = max(sub, (max_block_bytes // max(1, row_bytes)) // sub * sub)

    steps = pl.cdiv(rows, max_rows)
    if min_parallel > 1 and rows > sub:
        # Even split across TensorCores (megacore) for this mem-bound stream.
        steps = max(steps, min_parallel)
        steps = -(-steps // min_parallel) * min_parallel
    tile_rows = -(-rows // steps)                   # cdiv
    tile_rows = -(-tile_rows // sub) * sub          # sublane-aligned block
    if tile_rows >= rows:
        tile_rows = rows                            # full dim is always legal
    grid = pl.cdiv(rows, tile_rows)                 # ragged last block: Pallas masks it

    n = rows * cols
    cost = pl.CostEstimate(
        flops=3 * n,                                # neg + add + recip
        transcendentals=n,                          # exp
        bytes_accessed=n * (in_bytes + out_bytes),
    )

    return pl.pallas_call(
        functools.partial(_sigmoid_kernel, approx=approx),
        out_shape=jax.ShapeDtypeStruct((rows, cols), out_dtype),
        grid=(grid,),
        in_specs=[pl.BlockSpec((tile_rows, cols), lambda i: (i, 0))],
        out_specs=pl.BlockSpec((tile_rows, cols), lambda i: (i, 0)),
        compiler_params=pltpu.CompilerParams(dimension_semantics=("parallel",)),
        cost_estimate=cost,
    )(x2d)


def _mask_forward_impl(weight, out_dtype, approx, max_block_bytes, min_parallel):
    orig_shape = weight.shape
    n = math.prod(orig_shape) if orig_shape else 1

    if n % _LANES == 0 and n > 0:
        # Copy-free lane-dense view: fully unmasked 128-wide stores.
        x2d = weight.reshape(n // _LANES, _LANES)
    else:
        # Keep the original row layout (no pad/slice copies); last block dim
        # equals the full trailing dim so the (8,128) rule is satisfied.
        last = orig_shape[-1] if weight.ndim >= 1 and orig_shape[-1] > 0 else 1
        x2d = weight.reshape(-1, last)

    out2d = _sigmoid_2d(x2d, out_dtype, approx, max_block_bytes, min_parallel)
    return out2d.reshape(orig_shape)


@functools.partial(
    jax.jit, static_argnames=("out_dtype", "approx_reciprocal", "max_block_bytes")
)
def mask_forward(
    weight: jax.Array,
    *,
    out_dtype=None,                 # e.g. jnp.bfloat16 to halve writeback traffic
    approx_reciprocal: bool = False,  # True -> EUP vrcp (fast, ~1e-4 abs error)
    max_block_bytes: int = 8 * 1024 * 1024,
) -> jax.Array:
    """sigmoid(weight) via a Pallas TPU kernel; works for any shape, no extra HBM copies."""
    dt = weight.dtype if out_dtype is None else jnp.dtype(out_dtype)
    return _mask_forward_impl(
        weight, dt, approx_reciprocal, max_block_bytes, _num_tensorcores()
    )


class Mask:
    """JAX mirror of the PyTorch Mask module (deterministic init: weight = 3.0)."""

    def __init__(self, channel=1, height=1024, width=513, dtype=jnp.float32):
        # nn.Parameter(torch.full((channel, height, width), 3.0))
        self.weight = jnp.full((channel, height, width), 3.0, dtype=dtype)

    def forward(self):
        return mask_forward(self.weight)


if __name__ == "__main__":
    key = jax.random.PRNGKey(0)  # forward() takes no inputs; key used for extra shape tests
    channel, height, width = 1, 64, 513  # small shape consistent with the module

    mask = Mask(channel=channel, height=height, width=width)
    out = jax.block_until_ready(mask.forward())

    ref = jax.nn.sigmoid(mask.weight)
    assert out.shape == (channel, height, width)
    assert out.dtype == jnp.float32
    assert jnp.allclose(out, ref, atol=1e-6), "mismatch vs reference sigmoid"

    # Lane-aligned shape -> exercises the copy-free (rows, 128) path.
    w_aligned = jax.random.normal(key, (1, 128, 512), dtype=jnp.float32)
    out_a = jax.block_until_ready(mask_forward(w_aligned))
    assert jnp.allclose(out_a, jax.nn.sigmoid(w_aligned), atol=1e-6), "mismatch (aligned)"

    # Odd, non-aligned shape -> exercises the full-trailing-dim / ragged-block path.
    w_odd = jax.random.normal(key, (3, 37, 211), dtype=jnp.float32)
    out_o = jax.block_until_ready(mask_forward(w_odd))
    assert jnp.allclose(out_o, jax.nn.sigmoid(w_odd), atol=1e-6), "mismatch (odd shape)"

    # Optional bf16-output path (halves writeback traffic).
    out_bf16 = jax.block_until_ready(mask_forward(mask.weight, out_dtype=jnp.bfloat16))
    assert out_bf16.dtype == jnp.bfloat16
    assert jnp.allclose(out_bf16.astype(jnp.float32), ref, atol=5e-3), "mismatch (bf16 out)"

    print("KERNEL_OK")
</pallas_src>

<mosaic_0001>
module attributes {stable_mosaic.version = 11 : i64} {
  func.func @_sigmoid_kernel(%arg0: i32, %arg1: memref<64x513xf32, #tpu.memory_space<vmem>>, %arg2: memref<64x513xf32, #tpu.memory_space<vmem>>) attributes {dimension_semantics = [#tpu.dimension_semantics<parallel>], iteration_bounds = array<i64: 1>, scalar_prefetch = 0 : i64, scratch_operands = 0 : i64, tpu.core_type = #tpu.core_type<tc>, window_params = [{transform_indices = @transform_0, window_bounds = array<i64: 64, 513>}, {transform_indices = @transform_1, window_bounds = array<i64: 64, 513>}]} {
    %c0 = arith.constant 0 : index
    %c0_0 = arith.constant 0 : index
    %0 = vector.load %arg1[%c0, %c0_0] : memref<64x513xf32, #tpu.memory_space<vmem>>, vector<64x513xf32>
    %cst = arith.constant 0.000000e+00 : f32
    %1 = vector.broadcast %cst : f32 to vector<64x513xf32>
    %2 = arith.subf %1, %0 : vector<64x513xf32>
    %3 = math.exp %2 : vector<64x513xf32>
    %cst_1 = arith.constant 1.000000e+00 : f32
    %4 = vector.broadcast %cst_1 : f32 to vector<64x513xf32>
    %5 = arith.addf %4, %3 : vector<64x513xf32>
    %6 = tpu.reciprocal %5 : vector<64x513xf32> -> vector<64x513xf32>
    %c0_2 = arith.constant 0 : index
    %c0_3 = arith.constant 0 : index
    %7 = vector.load %arg2[%c0_2, %c0_3] : memref<64x513xf32, #tpu.memory_space<vmem>>, vector<64x513xf32>
    tpu.vector_store %arg2[%c0_2, %c0_3], %6 {strides = array<i32>} : memref<64x513xf32, #tpu.memory_space<vmem>>, vector<64x513xf32>,
    return
  }
  func.func @transform_0(%arg0: i32) -> (i32, i32) {
    %c0_i32 = arith.constant 0 : i32
    %c0_i32_0 = arith.constant 0 : i32
    return %arg0, %c0_i32 : i32, i32
  }
  func.func @transform_1(%arg0: i32) -> (i32, i32) {
    %c0_i32 = arith.constant 0 : i32
    %c0_i32_0 = arith.constant 0 : i32
    return %arg0, %c0_i32 : i32, i32
  }
}

</mosaic_0001>

<bundles_post_ra>
// kernel: mask_forward.1
= control target key start
LH: loop header
LB: loop body
LE: loop exit
PB: predicated region body
PF: predicated region fallthrough
CT: control target
= control target key end

     0   :  { %6 = vsyncpa [#allocation3], 0  ;;  %s585_s0 = inlined_call_operand.hbm [shape: f32[64,513], index: 0, kind: input, shape index: {}]   ;;  %s586_s1 = inlined_call_operand.hbm [shape: f32[64,513], index: 1, kind: output, shape index: {}]  }
   0x1   :  { %7 = vsyncpa [#allocation4], 0  ;;  %s533_s6 = smov [#allocation2]   ;;  %s485_s10 = scalar_lea.hbm %s585_s0, 5120 }
   0x2   :  { %s13_s7 = sshll.u32 %s533_s6, 4  ;;  %p486_p0 = scmp.ne.s32.totalorder %s585_s0, %s485_s10  ;;  %s14_s7 = int_to_ptr.vmem [resolvable:$true] %s13_s7 }
   0x3   :  { %p489_p1 = scmp.lt.u32.totalorder %s485_s10, %s585_s0 }
   0x5   :  { %p491_p2 = pnand %p489_p1, %p486_p0 }
   0x7   :  { %494 = shalt.err (!%p491_p2)
}
   0x8   :  { %s495_s15 = scalar_lea.vmem %s14_s7, 5120  ;;  %p500_p4 = scmp.lt.s32.totalorder %s14_s7, %s14_s7 }
   0x9   :  { %p496_p3 = scmp.ne.s32.totalorder %s14_s7, %s495_s15  ;;  %p501_p5 = scmp.lt.s32.totalorder %s495_s15, %s495_s15 }
   0xb   :  { %p502_p6 = por %p501_p5, %p500_p4 }
   0xd   :  { %p503_p7 = pnand %p502_p6, %p496_p3 }
   0xf   :  { %506 = shalt.err (!%p503_p7)
}
  0x10   :  { %s534_s16 = smov 640   ;;  %s535_s17 = smov 40  }
  0x11   :  { %19 = dma.hbm_to_vmem [thread:$0]  %s585_s0, 5120, %s14_s7, [#allocation3], %s534_s16, %s534_s16, %s535_s17  }
  0x12   :  { %529 = dma.done.wait [#allocation3], 5120  }
  0x13   :  { %530 = vsyncadd [#allocation3], 4294962176  ;;  %v23_v0 = vld [vmem:[#allocation2] sm:$0xff]  ;;  %v24_v1 = vld [vmem:[#allocation2 + $0x8] sm:$0xff]  ;;  %vm267_vm0 = vcmask 7168   ;;  %s536_s0 = smov [#allocation5]  }
  0x14   :  { %v25_v2 = vld [vmem:[#allocation2 + $0x10] sm:$0xff]  ;;  %v63_v3 = vsub.f32 0.0, %v23_v0  ;;  %v64_v4 = vsub.f32 0.0, %v24_v1  ;;  %v26_v6 = vld [vmem:[#allocation2 + $0x18] sm:$0xff]  ;;  %v27_v7 = vld [vmem:[#allocation2 + $0x20] sm:$0xff]  ;;  %s309_s20 = sshll.u32 %s536_s0, 4  ;;  %s310_s20 = int_to_ptr.vmem [resolvable:$true] %s309_s20 }
  0x15   :  { %v65_v5 = vsub.f32 0.0, %v25_v2  ;;  %v28_v8 = vld [vmem:[#allocation2 + $0x28] sm:$0xff]  ;;  %v66_v9 = vsub.f32 0.0, %v26_v6  ;;  %v67_v10 = vsub.f32 0.0, %v27_v7  ;;  %v29_v12 = vld [vmem:[#allocation2 + $0x30] sm:$0xff]  ;;  %v30_v13 = vld [vmem:[#allocation2 + $0x38] sm:$0xff]  ;;  %p512_p9 = scmp.lt.s32.totalorder %s310_s20, %s310_s20 }
  0x16   :  { %v68_v11 = vsub.f32 0.0, %v28_v8  ;;  %v31_v14 = vld [vmem:[#allocation2 + $0x40] sm:$0xff]  ;;  %v103_v15 = vmul.f32 1.442695, %v63_v3  ;;  %v105_v16 = vmul.f32 1.442695, %v64_v4 }
  0x17   :  { %v107_v17 = vmul.f32 1.442695, %v65_v5  ;;  %v109_v18 = vmul.f32 1.442695, %v66_v9  ;;  %v111_v19 = vmul.f32 1.442695, %v67_v10 }
  0x18   :  { %325 = vpow2.f32 %v103_v15  ;;  %v69_v20 = vsub.f32 0.0, %v29_v12  ;;  %v70_v21 = vsub.f32 0.0, %v30_v13  ;;  %v71_v22 = vsub.f32 0.0, %v31_v14  ;;  %v32_v23 = vld [vmem:[#allocation2 + $0x48] sm:$0xff]  ;;  %v33_v24 = vld [vmem:[#allocation2 + $0x50] sm:$0xff]  ;;  %v34_v25 = vld [vmem:[#allocation2 + $0x58] sm:$0xff] }
  0x19   :  { %327 = vpow2.f32 %v105_v16  ;;  %v113_v26 = vmul.f32 1.442695, %v68_v11  ;;  %v72_v27 = vsub.f32 0.0, %v32_v23  ;;  %v35_v28 = vld [vmem:[#allocation2 + $0x60] sm:$0xff]  ;;  %v73_v30 = vsub.f32 0.0, %v33_v24  ;;  %v36_v50 = vld [vmem:[#allocation2 + $0x68] sm:$0xff] }
  0x1a   :  { %329 = vpow2.f32 %v107_v17  ;;  %v115_v29 = vmul.f32 1.442695, %v69_v20  ;;  %v117_v31 = vmul.f32 1.442695, %v70_v21  ;;  %v74_v32 = vsub.f32 0.0, %v34_v25  ;;  %v37_v53 = vld [vmem:[#allocation2 + $0x70] sm:$0xff] }
  0x1b   :  { %331 = vpow2.f32 %v109_v18  ;;  %v119_v33 = vmul.f32 1.442695, %v71_v22  ;;  %v75_v34 = vsub.f32 0.0, %v35_v28  ;;  %v121_v35 = vmul.f32 1.442695, %v72_v27  ;;  %v38_v56 = vld [vmem:[#allocation2 + $0x78] sm:$0xff] }
  0x1c   :  { %333 = vpow2.f32 %v111_v19  ;;  %v123_v36 = vmul.f32 1.442695, %v73_v30  ;;  %v125_v37 = vmul.f32 1.442695, %v74_v32  ;;  %v76_v59 = vsub.f32 0.0, %v36_v50  ;;  %v39_v60 = vld [vmem:[#allocation2 + $0x80] sm:$0xff] }
  0x1d   :  { %335 = vpow2.f32 %v113_v26  ;;  %v127_v38 = vmul.f32 1.442695, %v75_v34  ;;  %v77_v63 = vsub.f32 0.0, %v37_v53  ;;  %v40_v0 = vld [vmem:[#allocation2 + $0x88] sm:$0xff]  ;;  %v78_v3 = vsub.f32 0.0, %v38_v56  ;;  %v41_v4 = vld [vmem:[#allocation2 + $0x90] sm:$0xff] }
  0x1e   :  { %337 = vpow2.f32 %v115_v29  ;;  %v79_v7 = vsub.f32 0.0, %v39_v60  ;;  %v42_v8 = vld [vmem:[#allocation2 + $0x98] sm:$0xff]  ;;  %v129_v11 = vmul.f32 1.442695, %v76_v59  ;;  %v80_v12 = vsub.f32 0.0, %v40_v0  ;;  %v43_v13 = vld [vmem:[#allocation2 + $0xa0] sm:$0xff] }
  0x1f   :  { %339 = vpow2.f32 %v117_v31  ;;  %v131_v16 = vmul.f32 1.442695, %v77_v63  ;;  %v81_v17 = vsub.f32 0.0, %v41_v4  ;;  %v44_v18 = vld [vmem:[#allocation2 + $0xa8] sm:$0xff]  ;;  %v133_v20 = vmul.f32 1.442695, %v78_v3 }
  0x20   :  { %341 = vpow2.f32 %v119_v33  ;;  %v82_v21 = vsub.f32 0.0, %v42_v8  ;;  %v45_v22 = vld [vmem:[#allocation2 + $0xb0] sm:$0xff]  ;;  %v135_v24 = vmul.f32 1.442695, %v79_v7  ;;  %v83_v25 = vsub.f32 0.0, %v43_v13  ;;  %v46_v26 = vld [vmem:[#allocation2 + $0xb8] sm:$0xff] }
  0x21   :  { %343 = vpow2.f32 %v121_v35  ;;  %v137_v28 = vmul.f32 1.442695, %v80_v12  ;;  %v84_v29 = vsub.f32 0.0, %v44_v18  ;;  %v47_v30 = vld [vmem:[#allocation2 + $0xc0] sm:$0xff]  ;;  %v139_v32 = vmul.f32 1.442695, %v81_v17 }
  0x22   :  { %v326_v39 = vpop.eup %325  ;;  %345 = vpow2.f32 %v123_v36  ;;  %v85_v33 = vsub.f32 0.0, %v45_v22  ;;  %v48_v34 = vld [vmem:[#allocation2 + $0xc8] sm:$0xff]  ;;  %v141_v36 = vmul.f32 1.442695, %v82_v21  ;;  %v49_v0 = vld [vmem:[#allocation2 + $0xd0] sm:$0xff]  ;;  %v50_v3 = vld [vmem:[#allocation2 + $0xd8] sm:$0xff] }
  0x23   :  { %v328_v40 = vpop.eup %327  ;;  %v183_v41 = vadd.f32 1.0, %v326_v39  ;;  %347 = vpow2.f32 %v125_v37  ;;  %v86_v37 = vsub.f32 0.0, %v46_v26  ;;  %v143_v39 = vmul.f32 1.442695, %v83_v25  ;;  %v54_v18 = vld [vmem:[#allocation2 + $0xf8] sm:$0xff]  ;;  %v55_v22 = vld [vmem:[#allocation2 + $0x100] sm:$0xff] }
  0x24   :  { %v330_v42 = vpop.eup %329  ;;  %v184_v43 = vadd.f32 1.0, %v328_v40  ;;  %349 = vpow2.f32 %v127_v38  ;;  %v87_v40 = vsub.f32 0.0, %v47_v30  ;;  %v90_v13 = vsub.f32 0.0, %v50_v3  ;;  %s507_s21 = scalar_lea.vmem %s310_s20, 5120 }
  0x25   :  { %v332_v44 = vpop.eup %331  ;;  %351 = vrcp.f32 %v183_v41  ;;  %v185_v45 = vadd.f32 1.0, %v330_v42  ;;  %v145_v42 = vmul.f32 1.442695, %v84_v29  ;;  %p508_p8 = scmp.ne.s32.totalorder %s310_s20, %s507_s21  ;;  %p513_p10 = scmp.lt.s32.totalorder %s507_s21, %s507_s21 }
  0x26   :  { %v334_v46 = vpop.eup %333  ;;  %353 = vrcp.f32 %v184_v43  ;;  %v186_v47 = vadd.f32 1.0, %v332_v44  ;;  %v88_v43 = vsub.f32 0.0, %v48_v34  ;;  %v157_v30 = vmul.f32 1.442695, %v90_v13 }
  0x27   :  { %v336_v48 = vpop.eup %335  ;;  %355 = vrcp.f32 %v185_v45  ;;  %v187_v49 = vadd.f32 1.0, %v334_v46  ;;  %v147_v45 = vmul.f32 1.442695, %v85_v33  ;;  %p514_p11 = por %p513_p10, %p512_p9 }
  0x28   :  { %v338_v51 = vpop.eup %337  ;;  %357 = vrcp.f32 %v186_v47  ;;  %v188_v52 = vadd.f32 1.0, %v336_v48  ;;  %v149_v47 = vmul.f32 1.442695, %v86_v37 }
  0x29   :  { %v340_v54 = vpop.eup %339  ;;  %359 = vrcp.f32 %v187_v49  ;;  %v189_v55 = vadd.f32 1.0, %v338_v51  ;;  %v151_v49 = vmul.f32 1.442695, %v87_v40  ;;  %v153_v51 = vmul.f32 1.442695, %v88_v43  ;;  %v59_v40 = vld [vmem:[#allocation2 + $0x120] sm:$0xff]  ;;  %p515_p12 = pnand %p514_p11, %p508_p8 }
  0x2a   :  { %v342_v57 = vpop.eup %341  ;;  %361 = vrcp.f32 %v188_v52  ;;  %v190_v58 = vadd.f32 1.0, %v340_v54 }
  0x2b   :  { %v344_v61 = vpop.eup %343  ;;  %363 = vrcp.f32 %v189_v55  ;;  %v191_v62 = vadd.f32 1.0, %v342_v57 }
  0x2c   :  { %v346_v1 = vpop.eup %345  ;;  %365 = vrcp.f32 %v190_v58  ;;  %v192_v2 = vadd.f32 1.0, %v344_v61 }
  0x2d   :  { %v348_v5 = vpop.eup %347  ;;  %367 = vrcp.f32 %v191_v62  ;;  %v193_v6 = vadd.f32 1.0, %v346_v1 }
  0x2e   :  { %v350_v9 = vpop.eup %349  ;;  %369 = vrcp.f32 %v192_v2  ;;  %v194_v10 = vadd.f32 1.0, %v348_v5 }
  0x2f   :  { %v352_v14 = vpop.eup %351  ;;  %371 = vrcp.f32 %v193_v6  ;;  %v195_v15 = vadd.f32 1.0, %v350_v9  ;;  %v51_v6 = vld [vmem:[#allocation2 + $0xe0] sm:$0xff]  ;;  %v89_v9 = vsub.f32 0.0, %v49_v0 }
  0x30   :  { %v354_v19 = vpop.eup %353  ;;  %263 = vst [vmem:[#allocation5] sm:$0xff] %v352_v14  ;;  %373 = vrcp.f32 %v194_v10  ;;  %v52_v10 = vld [vmem:[#allocation2 + $0xe8] sm:$0xff]  ;;  %v53_v14 = vld [vmem:[#allocation2 + $0xf0] sm:$0xff]  ;;  %v91_v17 = vsub.f32 0.0, %v51_v6 }
  0x31   :  { %v356_v23 = vpop.eup %355  ;;  %264 = vst [vmem:[#allocation5 + $0x8] sm:$0xff] %v354_v19  ;;  %375 = vrcp.f32 %v195_v15  ;;  %v92_v21 = vsub.f32 0.0, %v52_v10  ;;  %v155_v25 = vmul.f32 1.442695, %v89_v9  ;;  %v93_v26 = vsub.f32 0.0, %v53_v14  ;;  %v62_v14 = vld [vmem:[#allocation2 + $0x138] sm:$0xff] }
  0x32   :  { %v358_v27 = vpop.eup %357  ;;  %265 = vst [vmem:[#allocation5 + $0x10] sm:$0xff] %v356_v23  ;;  %377 = vpow2.f32 %v129_v11  ;;  %v159_v34 = vmul.f32 1.442695, %v91_v17 }
  0x33   :  { %v360_v31 = vpop.eup %359  ;;  %266 = vst [vmem:[#allocation5 + $0x18] sm:$0xff] %v358_v27  ;;  %379 = vpow2.f32 %v131_v16  ;;  %v56_v27 = vld [vmem:[#allocation2 + $0x108] sm:$0xff] }
  0x34   :  { %v362_v35 = vpop.eup %361  ;;  %268 = vst.msk [vmem:[#allocation5 + $0x20] sm:$0xff] %vm267_vm0, %v360_v31  ;;  %381 = vpow2.f32 %v133_v20  ;;  %v94_v31 = vsub.f32 0.0, %v54_v18 }
  0x35   :  { %v364_v38 = vpop.eup %363  ;;  %269 = vst [vmem:[#allocation5 + $0x28] sm:$0xff] %v362_v35  ;;  %383 = vpow2.f32 %v135_v24  ;;  %v95_v35 = vsub.f32 0.0, %v55_v22 }
  0x36   :  { %v366_v41 = vpop.eup %365  ;;  %270 = vst [vmem:[#allocation5 + $0x30] sm:$0xff] %v364_v38  ;;  %385 = vpow2.f32 %v137_v28  ;;  %v161_v38 = vmul.f32 1.442695, %v92_v21  ;;  %v102_v21 = vsub.f32 0.0, %v62_v14 }
  0x37   :  { %v368_v44 = vpop.eup %367  ;;  %271 = vst [vmem:[#allocation5 + $0x38] sm:$0xff] %v366_v41  ;;  %387 = vpow2.f32 %v139_v32  ;;  %v57_v32 = vld [vmem:[#allocation2 + $0x110] sm:$0xff] }
  0x38   :  { %v370_v46 = vpop.eup %369  ;;  %272 = vst [vmem:[#allocation5 + $0x40] sm:$0xff] %v368_v44  ;;  %389 = vpow2.f32 %v141_v36  ;;  %v58_v36 = vld [vmem:[#allocation2 + $0x118] sm:$0xff]  ;;  %v97_v43 = vsub.f32 0.0, %v57_v32  ;;  %v60_v44 = vld [vmem:[#allocation2 + $0x128] sm:$0xff] }
  0x39   :  { %v372_v48 = vpop.eup %371  ;;  %273 = vst.msk [vmem:[#allocation5 + $0x48] sm:$0xff] %vm267_vm0, %v370_v46  ;;  %391 = vpow2.f32 %v143_v39  ;;  %v96_v39 = vsub.f32 0.0, %v56_v27  ;;  %v165_v46 = vmul.f32 1.442695, %v94_v31 }
  0x3a   :  { %v374_v50 = vpop.eup %373  ;;  %274 = vst [vmem:[#allocation5 + $0x50] sm:$0xff] %v372_v48  ;;  %393 = vpow2.f32 %v145_v42  ;;  %v163_v42 = vmul.f32 1.442695, %v93_v26  ;;  %v61_v48 = vld [vmem:[#allocation2 + $0x130] sm:$0xff] }
  0x3b   :  { %v376_v52 = vpop.eup %375  ;;  %275 = vst [vmem:[#allocation5 + $0x58] sm:$0xff] %v374_v50  ;;  %395 = vpow2.f32 %v147_v45  ;;  %v167_v50 = vmul.f32 1.442695, %v95_v35 }
  0x3c   :  { %v378_v53 = vpop.eup %377  ;;  %276 = vst [vmem:[#allocation5 + $0x60] sm:$0xff] %v376_v52  ;;  %397 = vpow2.f32 %v149_v47  ;;  %v98_v47 = vsub.f32 0.0, %v58_v36 }
  0x3d   :  { %v380_v54 = vpop.eup %379  ;;  %v196_v55 = vadd.f32 1.0, %v378_v53  ;;  %399 = vpow2.f32 %v151_v49  ;;  %v169_v53 = vmul.f32 1.442695, %v96_v39 }
  0x3e   :  { %v382_v56 = vpop.eup %381  ;;  %v197_v57 = vadd.f32 1.0, %v380_v54  ;;  %401 = vpow2.f32 %v153_v51  ;;  %v99_v51 = vsub.f32 0.0, %v59_v40  ;;  %v100_v54 = vsub.f32 0.0, %v60_v44 }
  0x3f   :  { %v384_v58 = vpop.eup %383  ;;  %403 = vrcp.f32 %v196_v55  ;;  %v198_v59 = vadd.f32 1.0, %v382_v56  ;;  %v171_v56 = vmul.f32 1.442695, %v97_v43 }
  0x40   :  { %v386_v60 = vpop.eup %385  ;;  %405 = vrcp.f32 %v197_v57  ;;  %v199_v61 = vadd.f32 1.0, %v384_v58  ;;  %v101_v57 = vsub.f32 0.0, %v61_v48 }
  0x41   :  { %v388_v62 = vpop.eup %387  ;;  %407 = vrcp.f32 %v198_v59  ;;  %v200_v63 = vadd.f32 1.0, %v386_v60  ;;  %v173_v59 = vmul.f32 1.442695, %v98_v47 }
  0x42   :  { %v390_v1 = vpop.eup %389  ;;  %409 = vrcp.f32 %v199_v61  ;;  %v201_v2 = vadd.f32 1.0, %v388_v62  ;;  %v175_v61 = vmul.f32 1.442695, %v99_v51 }
  0x43   :  { %v392_v4 = vpop.eup %391  ;;  %411 = vrcp.f32 %v200_v63  ;;  %v202_v5 = vadd.f32 1.0, %v390_v1  ;;  %v177_v63 = vmul.f32 1.442695, %v100_v54  ;;  %v179_v1 = vmul.f32 1.442695, %v101_v57 }
  0x44   :  { %v394_v7 = vpop.eup %393  ;;  %413 = vrcp.f32 %v201_v2  ;;  %v203_v8 = vadd.f32 1.0, %v392_v4 }
  0x45   :  { %v396_v11 = vpop.eup %395  ;;  %415 = vrcp.f32 %v202_v5  ;;  %v204_v12 = vadd.f32 1.0, %v394_v7 }
  0x46   :  { %v398_v15 = vpop.eup %397  ;;  %417 = vrcp.f32 %v203_v8  ;;  %v205_v16 = vadd.f32 1.0, %v396_v11 }
  0x47   :  { %v400_v19 = vpop.eup %399  ;;  %419 = vrcp.f32 %v204_v12  ;;  %v206_v20 = vadd.f32 1.0, %v398_v15 }
  0x48   :  { %v402_v23 = vpop.eup %401  ;;  %421 = vrcp.f32 %v205_v16  ;;  %v207_v24 = vadd.f32 1.0, %v400_v19 }
  0x49   :  { %v404_v28 = vpop.eup %403  ;;  %423 = vrcp.f32 %v206_v20  ;;  %v208_v29 = vadd.f32 1.0, %v402_v23 }
  0x4a   :  { %v406_v33 = vpop.eup %405  ;;  %277 = vst [vmem:[#allocation5 + $0x68] sm:$0xff] %v404_v28  ;;  %425 = vrcp.f32 %v207_v24 }
  0x4b   :  { %v408_v37 = vpop.eup %407  ;;  %278 = vst.msk [vmem:[#allocation5 + $0x70] sm:$0xff] %vm267_vm0, %v406_v33  ;;  %427 = vrcp.f32 %v208_v29 }
  0x4c   :  { %v410_v41 = vpop.eup %409  ;;  %279 = vst [vmem:[#allocation5 + $0x78] sm:$0xff] %v408_v37  ;;  %429 = vpow2.f32 %v155_v25 }
  0x4d   :  { %v412_v45 = vpop.eup %411  ;;  %280 = vst [vmem:[#allocation5 + $0x80] sm:$0xff] %v410_v41  ;;  %431 = vpow2.f32 %v157_v30  ;;  %v181_v30 = vmul.f32 1.442695, %v102_v21 }
  0x4e   :  { %v414_v49 = vpop.eup %413  ;;  %281 = vst [vmem:[#allocation5 + $0x88] sm:$0xff] %v412_v45  ;;  %433 = vpow2.f32 %v159_v34 }
  0x4f   :  { %v416_v52 = vpop.eup %415  ;;  %282 = vst [vmem:[#allocation5 + $0x90] sm:$0xff] %v414_v49  ;;  %435 = vpow2.f32 %v161_v38 }
  0x50   :  { %v418_v55 = vpop.eup %417  ;;  %283 = vst.msk [vmem:[#allocation5 + $0x98] sm:$0xff] %vm267_vm0, %v416_v52  ;;  %437 = vpow2.f32 %v163_v42 }
  0x51   :  { %v420_v58 = vpop.eup %419  ;;  %284 = vst [vmem:[#allocation5 + $0xa0] sm:$0xff] %v418_v55  ;;  %439 = vpow2.f32 %v165_v46 }
  0x52   :  { %v422_v60 = vpop.eup %421  ;;  %285 = vst [vmem:[#allocation5 + $0xa8] sm:$0xff] %v420_v58  ;;  %441 = vpow2.f32 %v167_v50 }
  0x53   :  { %v424_v62 = vpop.eup %423  ;;  %286 = vst [vmem:[#allocation5 + $0xb0] sm:$0xff] %v422_v60  ;;  %443 = vpow2.f32 %v169_v53 }
  0x54   :  { %v426_v0 = vpop.eup %425  ;;  %287 = vst [vmem:[#allocation5 + $0xb8] sm:$0xff] %v424_v62  ;;  %445 = vpow2.f32 %v171_v56 }
  0x55   :  { %v428_v2 = vpop.eup %427  ;;  %288 = vst.msk [vmem:[#allocation5 + $0xc0] sm:$0xff] %vm267_vm0, %v426_v0  ;;  %447 = vpow2.f32 %v173_v59 }
  0x56   :  { %v430_v3 = vpop.eup %429  ;;  %289 = vst [vmem:[#allocation5 + $0xc8] sm:$0xff] %v428_v2  ;;  %449 = vpow2.f32 %v175_v61 }
  0x57   :  { %v432_v4 = vpop.eup %431  ;;  %v209_v5 = vadd.f32 1.0, %v430_v3  ;;  %451 = vpow2.f32 %v177_v63 }
  0x58   :  { %v434_v6 = vpop.eup %433  ;;  %v210_v7 = vadd.f32 1.0, %v432_v4  ;;  %453 = vpow2.f32 %v179_v1 }
  0x59   :  { %v436_v8 = vpop.eup %435  ;;  %455 = vrcp.f32 %v209_v5  ;;  %v211_v9 = vadd.f32 1.0, %v434_v6 }
  0x5a   :  { %v438_v10 = vpop.eup %437  ;;  %457 = vrcp.f32 %v210_v7  ;;  %v212_v11 = vadd.f32 1.0, %v436_v8 }
  0x5b   :  { %v440_v12 = vpop.eup %439  ;;  %459 = vrcp.f32 %v211_v9  ;;  %v213_v13 = vadd.f32 1.0, %v438_v10 }
  0x5c   :  { %v442_v15 = vpop.eup %441  ;;  %461 = vrcp.f32 %v212_v11  ;;  %v214_v16 = vadd.f32 1.0, %v440_v12 }
  0x5d   :  { %v444_v17 = vpop.eup %443  ;;  %463 = vrcp.f32 %v213_v13  ;;  %v215_v18 = vadd.f32 1.0, %v442_v15 }
  0x5e   :  { %v446_v19 = vpop.eup %445  ;;  %465 = vrcp.f32 %v214_v16  ;;  %v216_v20 = vadd.f32 1.0, %v444_v17 }
  0x5f   :  { %v448_v22 = vpop.eup %447  ;;  %467 = vrcp.f32 %v215_v18  ;;  %v217_v23 = vadd.f32 1.0, %v446_v19 }
  0x60   :  { %v450_v24 = vpop.eup %449  ;;  %469 = vrcp.f32 %v216_v20  ;;  %v218_v25 = vadd.f32 1.0, %v448_v22 }
  0x61   :  { %v452_v26 = vpop.eup %451  ;;  %471 = vrcp.f32 %v217_v23  ;;  %v219_v27 = vadd.f32 1.0, %v450_v24 }
  0x62   :  { %v454_v28 = vpop.eup %453  ;;  %473 = vrcp.f32 %v218_v25  ;;  %v220_v29 = vadd.f32 1.0, %v452_v26 }
  0x63   :  { %v456_v31 = vpop.eup %455  ;;  %475 = vrcp.f32 %v219_v27  ;;  %v221_v32 = vadd.f32 1.0, %v454_v28 }
  0x64   :  { %v458_v33 = vpop.eup %457  ;;  %290 = vst [vmem:[#allocation5 + $0xd0] sm:$0xff] %v456_v31  ;;  %477 = vrcp.f32 %v220_v29 }
  0x65   :  { %v460_v34 = vpop.eup %459  ;;  %291 = vst [vmem:[#allocation5 + $0xd8] sm:$0xff] %v458_v33  ;;  %479 = vrcp.f32 %v221_v32 }
  0x66   :  { %v462_v35 = vpop.eup %461  ;;  %292 = vst [vmem:[#allocation5 + $0xe0] sm:$0xff] %v460_v34  ;;  %481 = vpow2.f32 %v181_v30 }
  0x67   :  { %v464_v36 = vpop.eup %463  ;;  %293 = vst.msk [vmem:[#allocation5 + $0xe8] sm:$0xff] %vm267_vm0, %v462_v35 }
  0x68   :  { %v466_v37 = vpop.eup %465  ;;  %294 = vst [vmem:[#allocation5 + $0xf0] sm:$0xff] %v464_v36 }
  0x69   :  { %v468_v38 = vpop.eup %467  ;;  %295 = vst [vmem:[#allocation5 + $0xf8] sm:$0xff] %v466_v37 }
  0x6a   :  { %v470_v39 = vpop.eup %469  ;;  %296 = vst [vmem:[#allocation5 + $0x100] sm:$0xff] %v468_v38 }
  0x6b   :  { %v472_v40 = vpop.eup %471  ;;  %297 = vst [vmem:[#allocation5 + $0x108] sm:$0xff] %v470_v39 }
  0x6c   :  { %v474_v41 = vpop.eup %473  ;;  %298 = vst.msk [vmem:[#allocation5 + $0x110] sm:$0xff] %vm267_vm0, %v472_v40 }
  0x6d   :  { %v476_v42 = vpop.eup %475  ;;  %299 = vst [vmem:[#allocation5 + $0x118] sm:$0xff] %v474_v41 }
  0x6e   :  { %v478_v43 = vpop.eup %477  ;;  %300 = vst [vmem:[#allocation5 + $0x120] sm:$0xff] %v476_v42 }
  0x6f   :  { %v480_v44 = vpop.eup %479  ;;  %301 = vst [vmem:[#allocation5 + $0x128] sm:$0xff] %v478_v43 }
  0x70   :  { %v482_v45 = vpop.eup %481  ;;  %302 = vst [vmem:[#allocation5 + $0x130] sm:$0xff] %v480_v44 }
  0x71   :  { %v222_v46 = vadd.f32 1.0, %v482_v45 }
  0x73   :  { %483 = vrcp.f32 %v222_v46 }
  0x7d   :  { %v484_v47 = vpop.eup %483 }
  0x7e   :  { %303 = vst.msk [vmem:[#allocation5 + $0x138] sm:$0xff] %vm267_vm0, %v484_v47 }
  0x7f   :  { %518 = shalt.err (!%p515_p12)
}
  0x80   :  { %s519_s24 = scalar_lea.hbm %s586_s1, 5120 }
  0x81   :  { %p520_p13 = scmp.ne.s32.totalorder %s586_s1, %s519_s24  ;;  %p523_p0 = scmp.lt.u32.totalorder %s519_s24, %s586_s1 }
  0x83   :  { %p525_p1 = pnand %p523_p0, %p520_p13 }
  0x85   :  { %528 = shalt.err (!%p525_p1)
}
  0x86   :  { %315 = dma.vmem_to_hbm [thread:$0]  %s310_s20, 5120, %s586_s1, [#allocation4], %s534_s16, %s534_s16, %s535_s17  }
  0x87   :  { %531 = dma.done.wait [#allocation4], 5120  }
  0x88   :  { %532 = vsyncadd [#allocation4], 4294962176 }
  0x89   :  { %319 = vsyncpa [#allocation3], 1 }
  0x8a   :  { %320 = vsyncpa [#allocation4], 1 }

</bundles_post_ra>
